<compile_context>
chip_gen: v6e
topology: v6e:2x2x1
jax: 0.10.0
libtpu: 0.0.40
codegen_flags: <defaults>
</compile_context>

<pallas_src>
import math
import numpy as np
import jax
import jax.numpy as jnp
from jax.experimental import pallas as pl
from jax.experimental.pallas import tpu as pltpu

BATCH = 2
UNITS = 32      # GatedLinearUnit(units=32)


# ---------------- kernel: whole forward in one single-program pallas_call ----------------
def glu_kernel(x2d_ref, wl_ref, bl_ref, wo_ref, bo_ref, o_ref):
    # x2d_ref : (B*U, U) f32   -- batch folded into rows (sublanes)
    # wl_ref  : (U, U)   f32   -- layer.weight, pre-transposed to (in, out)
    # bl_ref  : (1, U)   f32
    # wo_ref  : (U, U)   f32   -- output.weight, pre-transposed to (in, out)
    # bo_ref  : (1, U)   f32
    # o_ref   : (B*U, U) f32
    bu, u = x2d_ref.shape
    b = bu // u

    x2d = x2d_ref[...]

    # Stage 1: both Linear layers, batch-fused into single (B*U,U) x (U,U) matmuls.
    lin = jnp.dot(x2d, wl_ref[...], preferred_element_type=jnp.float32) + bl_ref[...]
    z = jnp.dot(x2d, wo_ref[...], preferred_element_type=jnp.float32) + bo_ref[...]
    gate = 1.0 / (1.0 + jnp.exp(-z))   # exact sigmoid: exp on EUP + exact divide

    # Stage 2: per-batch gating matmul  layer(x_b) @ sigmoid(output(x_b)).
    # Row offsets r are multiples of 8 -> sublane-tile-aligned slices and stores
    # (no lane shuffles).  BATCH is tiny and static -> fully unrolled.
    for bi in range(b):
        r = bi * u
        o_ref[pl.ds(r, u), :] = jnp.dot(
            lin[r:r + u, :], gate[r:r + u, :], preferred_element_type=jnp.float32
        )


# ---------------- wrapper ----------------
def _vmem():
    return pl.BlockSpec(memory_space=pltpu.MemorySpace.VMEM)


@jax.jit
def gated_linear_unit_pallas(x, w_layer, b_layer, w_out, b_out):
    bsz, u, _ = x.shape
    x2d = x.reshape(bsz * u, u)                      # fold batch into rows for stage 1
    out2d = pl.pallas_call(
        glu_kernel,
        out_shape=jax.ShapeDtypeStruct((bsz * u, u), jnp.float32),
        in_specs=[_vmem(), _vmem(), _vmem(), _vmem(), _vmem()],
        out_specs=_vmem(),
    )(x2d, w_layer, b_layer.reshape(1, u), w_out, b_out.reshape(1, u))
    return out2d.reshape(bsz, u, u)


# ---------------- pure-JAX reference (same math, no Pallas) ----------------
def gated_linear_unit_ref(x, w_layer, b_layer, w_out, b_out):
    hp = jax.lax.Precision.HIGHEST
    lin = jnp.matmul(x, w_layer, precision=hp) + b_layer      # nn.Linear, weight stored (in,out)
    z = jnp.matmul(x, w_out, precision=hp) + b_out
    gate = 1.0 / (1.0 + jnp.exp(-z))                          # == F.sigmoid
    return jnp.matmul(lin, gate, precision=hp)                # batched `@`, as in PyTorch


# ---------------- deterministic parameter init (PyTorch-Linear-style uniform) ----------------
def init_params(key, units):
    k1, k2, k3, k4 = jax.random.split(key, 4)
    bound = 1.0 / math.sqrt(units)
    u = lambda k, shape: jax.random.uniform(k, shape, jnp.float32, -bound, bound)
    w_layer = u(k1, (units, units))               # stored as (in, out)
    b_layer = u(k2, (units,))
    w_out = u(k3, (units, units))
    b_out = u(k4, (units,))
    return w_layer, b_layer, w_out, b_out


if __name__ == "__main__":
    root = jax.random.PRNGKey(0)
    kp, kx = jax.random.split(root)
    w_layer, b_layer, w_out, b_out = init_params(kp, UNITS)
    x = jax.random.normal(kx, (BATCH, UNITS, UNITS), jnp.float32)

    out = gated_linear_unit_pallas(x, w_layer, b_layer, w_out, b_out)
    out = jax.block_until_ready(out)

    ref = gated_linear_unit_ref(x, w_layer, b_layer, w_out, b_out)
    # Tightened tolerance (all-f32 path) so layout/slicing bugs are actually caught.
    np.testing.assert_allclose(np.asarray(out), np.asarray(ref), rtol=1e-5, atol=1e-5)

    print("KERNEL_OK")
</pallas_src>

<mosaic_0001>
module attributes {stable_mosaic.version = 11 : i64} {
  func.func @glu_kernel(%arg0: memref<64x32xf32, #tpu.memory_space<vmem>>, %arg1: memref<32x32xf32, #tpu.memory_space<vmem>>, %arg2: memref<1x32xf32, #tpu.memory_space<vmem>>, %arg3: memref<32x32xf32, #tpu.memory_space<vmem>>, %arg4: memref<1x32xf32, #tpu.memory_space<vmem>>, %arg5: memref<64x32xf32, #tpu.memory_space<vmem>>) attributes {dimension_semantics = [], scalar_prefetch = 0 : i64, scratch_operands = 0 : i64, tpu.core_type = #tpu.core_type<tc>} {
    %c0 = arith.constant 0 : index
    %c0_0 = arith.constant 0 : index
    %0 = vector.load %arg0[%c0, %c0_0] : memref<64x32xf32, #tpu.memory_space<vmem>>, vector<64x32xf32>
    %c0_1 = arith.constant 0 : index
    %c0_2 = arith.constant 0 : index
    %1 = vector.load %arg1[%c0_1, %c0_2] : memref<32x32xf32, #tpu.memory_space<vmem>>, vector<32x32xf32>
    %cst = arith.constant dense<0.000000e+00> : vector<64x32xf32>
    %2 = tpu.matmul %0, %1, %cst {dimension_numbers = #tpu.dot_dimension_numbers<[1], [0], [0], [1], [0, 0, 1, 1], [], []>} : vector<64x32xf32>, vector<32x32xf32>, vector<64x32xf32> -> vector<64x32xf32>
    %c0_3 = arith.constant 0 : index
    %c0_4 = arith.constant 0 : index
    %3 = vector.load %arg2[%c0_3, %c0_4] : memref<1x32xf32, #tpu.memory_space<vmem>>, vector<1x32xf32>
    %4 = vector.broadcast %3 : vector<1x32xf32> to vector<64x32xf32>
    %5 = arith.addf %2, %4 : vector<64x32xf32>
    %c0_5 = arith.constant 0 : index
    %c0_6 = arith.constant 0 : index
    %6 = vector.load %arg3[%c0_5, %c0_6] : memref<32x32xf32, #tpu.memory_space<vmem>>, vector<32x32xf32>
    %cst_7 = arith.constant dense<0.000000e+00> : vector<64x32xf32>
    %7 = tpu.matmul %0, %6, %cst_7 {dimension_numbers = #tpu.dot_dimension_numbers<[1], [0], [0], [1], [0, 0, 1, 1], [], []>} : vector<64x32xf32>, vector<32x32xf32>, vector<64x32xf32> -> vector<64x32xf32>
    %c0_8 = arith.constant 0 : index
    %c0_9 = arith.constant 0 : index
    %8 = vector.load %arg4[%c0_8, %c0_9] : memref<1x32xf32, #tpu.memory_space<vmem>>, vector<1x32xf32>
    %9 = vector.broadcast %8 : vector<1x32xf32> to vector<64x32xf32>
    %10 = arith.addf %7, %9 : vector<64x32xf32>
    %cst_10 = arith.constant 0.000000e+00 : f32
    %11 = vector.broadcast %cst_10 : f32 to vector<64x32xf32>
    %12 = arith.subf %11, %10 : vector<64x32xf32>
    %13 = math.exp %12 : vector<64x32xf32>
    %cst_11 = arith.constant 1.000000e+00 : f32
    %14 = vector.broadcast %cst_11 : f32 to vector<64x32xf32>
    %15 = arith.addf %14, %13 : vector<64x32xf32>
    %cst_12 = arith.constant 1.000000e+00 : f32
    %16 = vector.broadcast %cst_12 : f32 to vector<64x32xf32>
    %17 = arith.divf %16, %15 : vector<64x32xf32>
    %18 = vector.extract_strided_slice %5 {offsets = [0, 0], sizes = [32, 32], strides = [1, 1]} : vector<64x32xf32> to vector<32x32xf32>
    %19 = vector.extract_strided_slice %17 {offsets = [0, 0], sizes = [32, 32], strides = [1, 1]} : vector<64x32xf32> to vector<32x32xf32>
    %cst_13 = arith.constant dense<0.000000e+00> : vector<32x32xf32>
    %20 = tpu.matmul %18, %19, %cst_13 {dimension_numbers = #tpu.dot_dimension_numbers<[1], [0], [0], [1], [0, 0, 1, 1], [], []>} : vector<32x32xf32>, vector<32x32xf32>, vector<32x32xf32> -> vector<32x32xf32>
    %c0_14 = arith.constant 0 : index
    %c0_15 = arith.constant 0 : index
    %21 = vector.load %arg5[%c0_14, %c0_15] : memref<64x32xf32, #tpu.memory_space<vmem>>, vector<32x32xf32>
    tpu.vector_store %arg5[%c0_14, %c0_15], %20 {strides = array<i32>} : memref<64x32xf32, #tpu.memory_space<vmem>>, vector<32x32xf32>,
    %22 = vector.extract_strided_slice %5 {offsets = [32, 0], sizes = [32, 32], strides = [1, 1]} : vector<64x32xf32> to vector<32x32xf32>
    %23 = vector.extract_strided_slice %17 {offsets = [32, 0], sizes = [32, 32], strides = [1, 1]} : vector<64x32xf32> to vector<32x32xf32>
    %cst_16 = arith.constant dense<0.000000e+00> : vector<32x32xf32>
    %24 = tpu.matmul %22, %23, %cst_16 {dimension_numbers = #tpu.dot_dimension_numbers<[1], [0], [0], [1], [0, 0, 1, 1], [], []>} : vector<32x32xf32>, vector<32x32xf32>, vector<32x32xf32> -> vector<32x32xf32>
    %c32 = arith.constant 32 : index
    %c0_17 = arith.constant 0 : index
    %25 = vector.load %arg5[%c32, %c0_17] : memref<64x32xf32, #tpu.memory_space<vmem>>, vector<32x32xf32>
    tpu.vector_store %arg5[%c32, %c0_17], %24 {strides = array<i32>} : memref<64x32xf32, #tpu.memory_space<vmem>>, vector<32x32xf32>,
    return
  }
}

</mosaic_0001>

<bundles_post_ra>
// kernel: gated_linear_unit_pallas.1
= control target key start
LH: loop header
LB: loop body
LE: loop exit
PB: predicated region body
PF: predicated region fallthrough
CT: control target
= control target key end

     0   :  { %10 = vsyncpa [#allocation3], 0  ;;  %s970_s0 = inlined_call_operand.hbm [shape: f32[64,32], index: 0, kind: input, shape index: {}]   ;;  %s971_s1 = inlined_call_operand.hbm [shape: f32[32,32], index: 1, kind: input, shape index: {}]   ;;  %s972_s2 = inlined_call_operand.vmem [shape: f32[1,32], index: 2, kind: input, shape index: {}]   ;;  %s973_s3 = inlined_call_operand.hbm [shape: f32[32,32], index: 3, kind: input, shape index: {}]   ;;  %s974_s4 = inlined_call_operand.vmem [shape: f32[1,32], index: 4, kind: input, shape index: {}]   ;;  %s975_s5 = inlined_call_operand.hbm [shape: f32[64,32], index: 5, kind: output, shape index: {}]  }
   0x1   :  { %11 = vsyncpa [#allocation6], 0 }
   0x2   :  { %12 = vsyncpa [#allocation4], 0  ;;  %s853_s18 = smov [#allocation5]   ;;  %s854_s20 = smov [#allocation2]  }
   0x3   :  { %s30_s19 = sshll.u32 %s853_s18, 4  ;;  %s18_s21 = sshll.u32 %s854_s20, 4  ;;  %s31_s19 = int_to_ptr.vmem [resolvable:$true] %s30_s19  ;;  %s19_s21 = int_to_ptr.vmem [resolvable:$true] %s18_s21 }
   0x4   :  { %s775_s22 = scalar_lea.vmem %s31_s19, 512  ;;  %p780_p1 = scmp.lt.s32.totalorder %s31_s19, %s31_s19 }
   0x5   :  { %p776_p0 = scmp.ne.s32.totalorder %s31_s19, %s775_s22  ;;  %p781_p2 = scmp.lt.s32.totalorder %s775_s22, %s775_s22 }
   0x7   :  { %p782_p3 = por %p781_p2, %p780_p1 }
   0x9   :  { %p783_p4 = pnand %p782_p3, %p776_p0 }
   0xb   :  { %786 = shalt.err (!%p783_p4)
}
   0xc   :  { %s855_s23 = smov 128   ;;  %s856_s24 = smov 8  }
   0xd   :  { %36 = dma.hbm_to_vmem [thread:$0]  %s971_s1, 512, %s31_s19, [#allocation6], %s855_s23, %s855_s23, %s856_s24  }
   0xe   :  { %s795_s27 = scalar_lea.vmem %s19_s21, 1024  ;;  %p800_p6 = scmp.lt.s32.totalorder %s19_s21, %s19_s21 }
   0xf   :  { %p796_p5 = scmp.ne.s32.totalorder %s19_s21, %s795_s27  ;;  %p801_p7 = scmp.lt.s32.totalorder %s795_s27, %s795_s27 }
  0x11   :  { %p802_p8 = por %p801_p7, %p800_p6 }
  0x13   :  { %p803_p9 = pnand %p802_p8, %p796_p5 }
  0x15   :  { %806 = shalt.err (!%p803_p9)
}
  0x16   :  { %24 = dma.hbm_to_vmem [thread:$0]  %s970_s0, 1024, %s19_s21, [#allocation3], %s855_s23, %s855_s23, %s856_s24  }
  0x17   :  { %s857_s30 = smov [#allocation7]  }
  0x18   :  { %s44_s6 = sshll.u32 %s857_s30, 4  ;;  %s45_s6 = int_to_ptr.vmem [resolvable:$true] %s44_s6 }
  0x19   :  { %s815_s7 = scalar_lea.vmem %s45_s6, 512  ;;  %p820_p11 = scmp.lt.s32.totalorder %s45_s6, %s45_s6 }
  0x1a   :  { %p816_p10 = scmp.ne.s32.totalorder %s45_s6, %s815_s7  ;;  %p821_p12 = scmp.lt.s32.totalorder %s815_s7, %s815_s7 }
  0x1c   :  { %p822_p13 = por %p821_p12, %p820_p11 }
  0x1e   :  { %p823_p0 = pnand %p822_p13, %p816_p10 }
  0x20   :  { %826 = shalt.err (!%p823_p0)
}
  0x21   :  { %50 = dma.hbm_to_vmem [thread:$0]  %s973_s3, 512, %s45_s6, [#allocation6], %s855_s23, %s855_s23, %s856_s24  }
  0x22   :  { %847 = dma.done.wait [#allocation3], 1024  }
  0x23   :  { %848 = vsyncadd [#allocation3], 4294966272 }
  0x24   :  { %849 = dma.done.wait [#allocation6], 1024  }
  0x25   :  { %850 = vsyncadd [#allocation6], 4294966272  ;;  %vm81_vm0 = vcmask 261120   ;;  %v214_v0 = vld [vmem:[#allocation7 + $0x18] sm:$0xff]  ;;  %v213_v1 = vld [vmem:[#allocation7 + $0x10] sm:$0xff] }
  0x26   :  { %681 = vmatprep.subr.mxu1 %v214_v0  ;;  %v62_v2 = vld [vmem:[#allocation2] sm:$0xff]  ;;  %v212_v3 = vld [vmem:[#allocation7 + $0x8] sm:$0xff]  ;;  %v73_v5 = vld [vmem:[#allocation5 + $0x18] sm:$0xff] }
  0x27   :  { %682 = vmatpush3.msra.mxu1 %v214_v0  ;;  %689 = vmatprep.mubr.msk.f32.mxu1 %vm81_vm0, %v62_v2  ;;  %v211_v4 = vld [vmem:[#allocation7] sm:$0xff]  ;;  %v72_v6 = vld [vmem:[#allocation5 + $0x10] sm:$0xff]  ;;  %v63_v7 = vld [vmem:[#allocation2 + $0x8] sm:$0xff] }
  0x28   :  { %683 = vmatprep.subr.mxu1 %v213_v1  ;;  %669 = vmatprep.mubr.msk.f32.mxu0 %vm81_vm0, %v62_v2  ;;  %v71_v8 = vld [vmem:[#allocation5 + $0x8] sm:$0xff]  ;;  %v64_v9 = vld [vmem:[#allocation2 + $0x10] sm:$0xff]  ;;  %v70_v10 = vld [vmem:[#allocation5] sm:$0xff] }
  0x29   :  { %684 = vmatpush3.msra.mxu1 %v213_v1  ;;  %661 = vmatprep.subr.mxu0 %v73_v5  ;;  %v65_v11 = vld [vmem:[#allocation2 + $0x18] sm:$0xff]  ;;  %v66_v12 = vld [vmem:[#allocation2 + $0x20] sm:$0xff]  ;;  %v67_v13 = vld [vmem:[#allocation2 + $0x28] sm:$0xff] }
  0x2a   :  { %685 = vmatprep.subr.mxu1 %v212_v3  ;;  %662 = vmatpush3.msra.mxu0 %v73_v5  ;;  %v68_v14 = vld [vmem:[#allocation2 + $0x30] sm:$0xff]  ;;  %v69_v15 = vld [vmem:[#allocation2 + $0x38] sm:$0xff]  ;;  %v604_v16 = vld [vmem:[%s974_s4] ss:$0 sm:$0xff] }
  0x2b   :  { %686 = vmatpush3.msra.mxu1 %v212_v3  ;;  %663 = vmatprep.subr.mxu0 %v72_v6  ;;  %v931_v26 = vld [vmem:[%s972_s2] ss:$0 sm:$0xff]  ;;  %s858_s2 = smov [#allocation8]  }
  0x2c   :  { %687 = vmatprep.subr.mxu1 %v211_v4  ;;  %664 = vmatpush3.msra.mxu0 %v72_v6  ;;  %s582_s4 = sshll.u32 %s858_s2, 4  ;;  %s583_s4 = int_to_ptr.vmem [resolvable:$true] %s582_s4 }
  0x2d   :  { %688 = vmatpush3.msra.mxu1 %v211_v4  ;;  %665 = vmatprep.subr.mxu0 %v71_v8  ;;  %s827_s11 = scalar_lea.vmem %s583_s4, 1024  ;;  %p832_p2 = scmp.lt.s32.totalorder %s583_s4, %s583_s4 }
  0x2e   :  { %690 = vmatmul.mubr.msk.f32.vlgmr.msra.gmra.mxu1 %vm81_vm0, %v63_v7  ;;  %666 = vmatpush3.msra.mxu0 %v71_v8  ;;  %p828_p1 = scmp.ne.s32.totalorder %s583_s4, %s827_s11  ;;  %p833_p3 = scmp.lt.s32.totalorder %s827_s11, %s827_s11 }
  0x2f   :  { %692 = vmatprep.mubr.msk.f32.mxu1 %vm81_vm0, %v64_v9  ;;  %667 = vmatprep.subr.mxu0 %v70_v10 }
  0x30   :  { %668 = vmatpush3.msra.mxu0 %v70_v10  ;;  %p834_p4 = por %p833_p3, %p832_p2 }
  0x31   :  { %670 = vmatmul.mubr.msk.f32.vlgmr.msra.gmra.mxu0 %vm81_vm0, %v63_v7 }
  0x32   :  { %693 = vmatmul.mubr.msk.f32.gmra.mxu1 %vm81_vm0, %v65_v11  ;;  %672 = vmatprep.mubr.msk.f32.mxu0 %vm81_vm0, %v64_v9  ;;  %p835_p5 = pnand %p834_p4, %p828_p1 }
  0x33   :  { %695 = vmatprep.mubr.msk.f32.mxu1 %vm81_vm0, %v66_v12 }
  0x35   :  { %673 = vmatmul.mubr.msk.f32.gmra.mxu0 %vm81_vm0, %v65_v11 }
  0x36   :  { %696 = vmatmul.mubr.msk.f32.gmra.mxu1 %vm81_vm0, %v67_v13  ;;  %675 = vmatprep.mubr.msk.f32.mxu0 %vm81_vm0, %v66_v12 }
  0x37   :  { %698 = vmatprep.mubr.msk.f32.mxu1 %vm81_vm0, %v68_v14 }
  0x39   :  { %676 = vmatmul.mubr.msk.f32.gmra.mxu0 %vm81_vm0, %v67_v13 }
  0x3a   :  { %699 = vmatmul.mubr.msk.f32.gmra.mxu1 %vm81_vm0, %v69_v15  ;;  %678 = vmatprep.mubr.msk.f32.mxu0 %vm81_vm0, %v68_v14 }
  0x3d   :  { %679 = vmatmul.mubr.msk.f32.gmra.mxu0 %vm81_vm0, %v69_v15 }
  0xee   :  { %v691_v17 = vpop.f32.mrf.mxu1 }
  0xef   :  { %v294_v18 = vadd.f32 %v691_v17, %v604_v16 }
  0xf0   :  { %v288_v19 = vpop.f32.mrf.mxu1 }
  0xf1   :  { %v328_v20 = vsub.f32 0.0, %v294_v18  ;;  %v289_v21 = vadd.f32 %v604_v16, %v288_v19  ;;  %v926_v23 = vpop.f32.mrf.mxu0 }
  0xf2   :  { %v694_v22 = vpop.f32.mrf.mxu1  ;;  %v178_v15 = vadd.f32 %v926_v23, %v931_v26 }
  0xf3   :  { %v327_v24 = vsub.f32 0.0, %v289_v21  ;;  %v304_v25 = vadd.f32 %v694_v22, %v604_v16  ;;  %v337_v27 = vmul.f32 1.442695, %v328_v20  ;;  %v172_v29 = vpop.f32.mrf.mxu0 }
  0xf4   :  { %v298_v28 = vpop.f32.mrf.mxu1  ;;  %v173_v34 = vadd.f32 %v931_v26, %v172_v29 }
  0xf5   :  { %v330_v30 = vsub.f32 0.0, %v304_v25  ;;  %v299_v31 = vadd.f32 %v604_v16, %v298_v28  ;;  %v335_v32 = vmul.f32 1.442695, %v327_v24  ;;  %v934_v35 = vpop.f32.mrf.mxu0  ;;  %735 = vpow2.f32 %v337_v27 }
  0xf6   :  { %v697_v33 = vpop.f32.mrf.mxu1  ;;  %709 = vmatprep.mubr.msk.f32.mxu0 %vm81_vm0, %v173_v34  ;;  %v188_v19 = vadd.f32 %v934_v35, %v931_v26 }
  0xf7   :  { %v341_v36 = vmul.f32 1.442695, %v330_v30  ;;  %v329_v37 = vsub.f32 0.0, %v299_v31  ;;  %v314_v38 = vadd.f32 %v697_v33, %v604_v16  ;;  %v182_v40 = vpop.f32.mrf.mxu0 }
  0xf8   :  { %v308_v39 = vpop.f32.mrf.mxu1  ;;  %v183_v14 = vadd.f32 %v931_v26, %v182_v40 }
  0xf9   :  { %737 = vpow2.f32 %v341_v36  ;;  %v339_v41 = vmul.f32 1.442695, %v329_v37  ;;  %v332_v42 = vsub.f32 0.0, %v314_v38  ;;  %v309_v43 = vadd.f32 %v604_v16, %v308_v39  ;;  %v937_v45 = vpop.f32.mrf.mxu0 }
  0xfa   :  { %739 = vpow2.f32 %v335_v32  ;;  %v700_v44 = vpop.f32.mrf.mxu1  ;;  %v198_v24 = vadd.f32 %v937_v45, %v931_v26 }
  0xfb   :  { %741 = vpow2.f32 %v339_v41  ;;  %v331_v46 = vsub.f32 0.0, %v309_v43  ;;  %v324_v47 = vadd.f32 %v700_v44, %v604_v16  ;;  %v345_v48 = vmul.f32 1.442695, %v332_v42  ;;  %v192_v50 = vpop.f32.mrf.mxu0 }
  0xfc   :  { %v318_v49 = vpop.f32.mrf.mxu1  ;;  %v193_v54 = vadd.f32 %v931_v26, %v192_v50 }
  0xfd   :  { %v334_v51 = vsub.f32 0.0, %v324_v47  ;;  %v319_v52 = vadd.f32 %v604_v16, %v318_v49  ;;  %v343_v53 = vmul.f32 1.442695, %v331_v46  ;;  %743 = vpow2.f32 %v345_v48  ;;  %v680_v16 = vpop.f32.mrf.mxu0 }
  0xfe   :  { %723 = vmatprep.mubr.msk.f32.mxu1 %vm81_vm0, %v193_v54  ;;  %v208_v25 = vadd.f32 %v680_v16, %v931_v26 }
  0xff   :  { %v349_v55 = vmul.f32 1.442695, %v334_v51  ;;  %v333_v56 = vsub.f32 0.0, %v319_v52  ;;  %v202_v20 = vpop.f32.mrf.mxu0 }
 0x100   :  { %v203_v23 = vadd.f32 %v931_v26, %v202_v20 }
 0x101   :  { %745 = vpow2.f32 %v349_v55  ;;  %v347_v57 = vmul.f32 1.442695, %v333_v56 }
 0x102   :  { %747 = vpow2.f32 %v343_v53  ;;  %v736_v58 = vpop.eup %735 }
 0x103   :  { %749 = vpow2.f32 %v347_v57  ;;  %v352_v63 = vadd.f32 1.0, %v736_v58 }
 0x106   :  { %v738_v59 = vpop.eup %737 }
 0x107   :  { %v740_v60 = vpop.eup %739  ;;  %v354_v61 = vadd.f32 1.0, %v738_v59 }
 0x108   :  { %v742_v62 = vpop.eup %741  ;;  %v351_v1 = vadd.f32 1.0, %v740_v60 }
 0x109   :  { %751 = vrcp.f32 %v354_v61  ;;  %v353_v0 = vadd.f32 1.0, %v742_v62 }
 0x10a   :  { %v744_v2 = vpop.eup %743 }
 0x10b   :  { %753 = vrcp.f32 %v353_v0  ;;  %v356_v7 = vadd.f32 1.0, %v744_v2 }
 0x10c   :  { %755 = vrcp.f32 %v352_v63 }
 0x10d   :  { %757 = vrcp.f32 %v351_v1 }
 0x10e   :  { %v746_v3 = vpop.eup %745 }
 0x10f   :  { %v748_v4 = vpop.eup %747  ;;  %v358_v5 = vadd.f32 1.0, %v746_v3 }
 0x110   :  { %v750_v6 = vpop.eup %749  ;;  %v355_v9 = vadd.f32 1.0, %v748_v4 }
 0x111   :  { %759 = vrcp.f32 %v358_v5  ;;  %v357_v8 = vadd.f32 1.0, %v750_v6 }
 0x113   :  { %761 = vrcp.f32 %v357_v8 }
 0x114   :  { %763 = vrcp.f32 %v356_v7 }
 0x115   :  { %765 = vrcp.f32 %v355_v9 }
 0x116   :  { %v752_v10 = vpop.eup %751 }
 0x117   :  { %701 = vmatprep.subr.mxu0 %v752_v10 }
 0x118   :  { %v754_v11 = vpop.eup %753  ;;  %702 = vmatpush3.msra.mxu0 %v752_v10 }
 0x119   :  { %703 = vmatprep.subr.mxu0 %v754_v11  ;;  %v756_v12 = vpop.eup %755 }
 0x11a   :  { %704 = vmatpush3.msra.mxu0 %v754_v11  ;;  %v758_v13 = vpop.eup %757 }
 0x11b   :  { %705 = vmatprep.subr.mxu0 %v756_v12 }
 0x11c   :  { %706 = vmatpush3.msra.mxu0 %v756_v12 }
 0x11d   :  { %707 = vmatprep.subr.mxu0 %v758_v13 }
 0x11e   :  { %v760_v17 = vpop.eup %759  ;;  %708 = vmatpush3.msra.mxu0 %v758_v13 }
 0x11f   :  { %715 = vmatprep.subr.mxu1 %v760_v17  ;;  %710 = vmatmul.mubr.msk.f32.vlgmr.msra.gmra.mxu0 %vm81_vm0, %v178_v15 }
 0x120   :  { %v762_v18 = vpop.eup %761  ;;  %716 = vmatpush3.msra.mxu1 %v760_v17  ;;  %712 = vmatprep.mubr.msk.f32.mxu0 %vm81_vm0, %v183_v14 }
 0x121   :  { %717 = vmatprep.subr.mxu1 %v762_v18  ;;  %v764_v21 = vpop.eup %763 }
 0x122   :  { %718 = vmatpush3.msra.mxu1 %v762_v18  ;;  %v766_v22 = vpop.eup %765 }
 0x123   :  { %719 = vmatprep.subr.mxu1 %v764_v21  ;;  %713 = vmatmul.mubr.msk.f32.gmra.mxu0 %vm81_vm0, %v188_v19 }
 0x124   :  { %720 = vmatpush3.msra.mxu1 %v764_v21 }
 0x125   :  { %721 = vmatprep.subr.mxu1 %v766_v22 }
 0x126   :  { %722 = vmatpush3.msra.mxu1 %v766_v22 }
 0x127   :  { %724 = vmatmul.mubr.msk.f32.vlgmr.msra.gmra.mxu1 %vm81_vm0, %v198_v24 }
 0x128   :  { %726 = vmatprep.mubr.msk.f32.mxu1 %vm81_vm0, %v203_v23 }
 0x12b   :  { %727 = vmatmul.mubr.msk.f32.gmra.mxu1 %vm81_vm0, %v208_v25 }
 0x1df   :  { %v711_v27 = vpop.f32.mrf.mxu0 }
 0x1e0   :  { %473 = vst.msk [vmem:[#allocation8 + $0x8] sm:$0xff] %vm81_vm0, %v711_v27 }
 0x1e1   :  { %v453_v28 = vpop.f32.mrf.mxu0 }
 0x1e2   :  { %472 = vst.msk [vmem:[#allocation8] sm:$0xff] %vm81_vm0, %v453_v28 }
 0x1e3   :  { %v714_v29 = vpop.f32.mrf.mxu0 }
 0x1e4   :  { %475 = vst.msk [vmem:[#allocation8 + $0x18] sm:$0xff] %vm81_vm0, %v714_v29 }
 0x1e5   :  { %v463_v30 = vpop.f32.mrf.mxu0 }
 0x1e6   :  { %474 = vst.msk [vmem:[#allocation8 + $0x10] sm:$0xff] %vm81_vm0, %v463_v30 }
 0x1e7   :  { %v725_v31 = vpop.f32.mrf.mxu1 }
 0x1e8   :  { %574 = vst.msk [vmem:[#allocation8 + $0x28] sm:$0xff] %vm81_vm0, %v725_v31 }
 0x1e9   :  { %v554_v32 = vpop.f32.mrf.mxu1 }
 0x1ea   :  { %573 = vst.msk [vmem:[#allocation8 + $0x20] sm:$0xff] %vm81_vm0, %v554_v32 }
 0x1eb   :  { %v728_v26 = vpop.f32.mrf.mxu1 }
 0x1ec   :  { %576 = vst.msk [vmem:[#allocation8 + $0x38] sm:$0xff] %vm81_vm0, %v728_v26 }
 0x1ed   :  { %v564_v33 = vpop.f32.mrf.mxu1 }
 0x1ee   :  { %575 = vst.msk [vmem:[#allocation8 + $0x30] sm:$0xff] %vm81_vm0, %v564_v33 }
 0x1ef   :  { %838 = shalt.err (!%p835_p5)
}
 0x1f0   :  { %588 = dma.vmem_to_hbm [thread:$0]  %s583_s4, 1024, %s975_s5, [#allocation4], %s855_s23, %s855_s23, %s856_s24  }
 0x1f1   :  { %851 = dma.done.wait [#allocation4], 1024  }
 0x1f2   :  { %852 = vsyncadd [#allocation4], 4294966272 }
 0x1f3   :  { %592 = vsyncpa [#allocation3], 1 }
 0x1f4   :  { %593 = vsyncpa [#allocation6], 1 }
 0x1f5   :  { %594 = vsyncpa [#allocation4], 1 }

</bundles_post_ra>
